<compile_context>
chip_gen: v6e
topology: v6e:2x2x1
jax: 0.10.0
libtpu: 0.0.40
codegen_flags: <defaults>
</compile_context>

<pallas_src>
import math

import jax
import jax.numpy as jnp
from jax.experimental import pallas as pl
from jax.experimental.pallas import tpu as pltpu


_IN_FEATURES = 9
_LANE = 128
_TB_MAX = 32768   # batch-tile width (lanes); v5e-safe, amortizes step overhead.
                  # On v7x alone this could go to 64K+ with vmem_limit_bytes set.


def _round_up(n, m):
    return ((n + m - 1) // m) * m


def _linear_kernel(x_ref, w_ref, b_ref, o_ref):
    # x_ref: (9, TB) f32 VMEM | w_ref: (9, 1) f32 VMEM | b_ref: (1,) f32 SMEM
    # o_ref: (1, TB) f32 VMEM  (lane-dense output tile -> unmasked stores)
    prod = x_ref[...] * w_ref[...]                     # VPU: full-tile multiply
    acc = jnp.sum(prod, axis=0, keepdims=True)         # XLU: sublane reduce (9 rows)
    o_ref[...] = (acc + b_ref[0]).astype(o_ref.dtype)


def snc_forward_xt(xT, weight, bias):
    """Forward of nn.Linear(9, 1) on an already-transposed input.

    xT: (9, B) f32 (feature-major), weight: (1, 9) f32, bias: (1,) f32.
    Returns (B, 1) f32.  Avoids any wrapper-side HBM relayout of x beyond a
    minimal zero-pad of the batch axis to the tile multiple.
    """
    K, B = xT.shape
    assert K == _IN_FEATURES

    # Tile selection: lane-multiple, capped at _TB_MAX, and >= 2 tiles whenever
    # there is enough batch so the parallel axis can use both v7x TensorCores.
    b_pad0 = _round_up(max(B, 1), _LANE)
    min_tiles = 2 if b_pad0 >= 2 * _LANE else 1
    n_tiles = max(min_tiles, pl.cdiv(b_pad0, _TB_MAX))
    tb = _round_up(pl.cdiv(b_pad0, n_tiles), _LANE)
    b_pad = n_tiles * tb

    xT = xT.astype(jnp.float32)
    if b_pad != B:
        # Padded columns evaluate to `bias` in out_t and are sliced off below.
        xT = jnp.pad(xT, ((0, 0), (0, b_pad - B)))

    w = weight.reshape(K, 1).astype(jnp.float32)   # (9, 1) column -> VMEM
    b = bias.reshape(1).astype(jnp.float32)        # (1,) scalar  -> SMEM

    out_t = pl.pallas_call(
        _linear_kernel,
        out_shape=jax.ShapeDtypeStruct((1, b_pad), jnp.float32),
        grid_spec=pltpu.PrefetchScalarGridSpec(
            num_scalar_prefetch=0,
            grid=(n_tiles,),
            in_specs=[
                pl.BlockSpec((K, tb), lambda i: (0, i)),     # x tile (9, tb)
                pl.BlockSpec((K, 1), lambda i: (0, 0)),      # weight column, resident
                pl.BlockSpec(memory_space=pltpu.MemorySpace.SMEM),  # bias scalar
            ],
            out_specs=pl.BlockSpec((1, tb), lambda i: (0, i)),
        ),
        compiler_params=pltpu.CompilerParams(
            # Batch tiles are independent -> shard across v7x's 2 TensorCores.
            dimension_semantics=("parallel",)),
    )(xT, w, b)

    return out_t[0, :B].reshape(B, 1)


def snc_forward(x, weight, bias):
    """PyTorch-layout API: x (B, 9), weight (1, 9), bias (1,) -> (B, 1).

    Thin compatibility wrapper; the transpose here is one extra HBM pass.
    # TODO(synk): in a real pipeline, emit x in (9, B) layout from the producer
    # and call snc_forward_xt directly to skip this relayout.
    """
    B, K = x.shape
    assert K == _IN_FEATURES
    return snc_forward_xt(x.astype(jnp.float32).T, weight, bias)


if __name__ == "__main__":
    key = jax.random.PRNGKey(0)
    k_x, k_w, k_b, k_x2 = jax.random.split(key, 4)

    B, IN, OUT = 8, 9, 1

    # Deterministic parameter init mimicking nn.Linear default:
    # U(-1/sqrt(in_features), 1/sqrt(in_features))
    bound = 1.0 / math.sqrt(IN)
    weight = jax.random.uniform(k_w, (OUT, IN), jnp.float32, -bound, bound)
    bias = jax.random.uniform(k_b, (OUT,), jnp.float32, -bound, bound)

    # Small batch (single tile).
    x = jax.random.normal(k_x, (B, IN), jnp.float32)
    out = snc_forward(x, weight, bias)
    jax.block_until_ready(out)
    ref = x @ weight.T + bias
    assert out.shape == (B, OUT)
    assert jnp.allclose(out, ref, atol=1e-5, rtol=1e-5)

    # Non-aligned batch exercising the multi-tile ("parallel") grid path.
    B2 = 300
    x2 = jax.random.normal(k_x2, (B2, IN), jnp.float32)
    out2 = snc_forward(x2, weight, bias)
    jax.block_until_ready(out2)
    ref2 = x2 @ weight.T + bias
    assert out2.shape == (B2, OUT)
    assert jnp.allclose(out2, ref2, atol=1e-5, rtol=1e-5)

    print("KERNEL_OK")
</pallas_src>

<mosaic_0001>
module attributes {stable_mosaic.version = 11 : i64} {
  func.func @_linear_kernel(%arg0: i32, %arg1: memref<9x128xf32, #tpu.memory_space<vmem>>, %arg2: memref<9x1xf32, #tpu.memory_space<vmem>>, %arg3: memref<1xf32, #tpu.memory_space<smem>>, %arg4: memref<1x128xf32, #tpu.memory_space<vmem>>) attributes {dimension_semantics = [#tpu.dimension_semantics<parallel>], iteration_bounds = array<i64: 1>, scalar_prefetch = 0 : i64, scratch_operands = 0 : i64, tpu.core_type = #tpu.core_type<tc>, window_params = [{transform_indices = @transform_0, window_bounds = array<i64: 9, 128>}, {pipeline_mode = #tpu.pipeline_mode<synchronous>, transform_indices = @transform_1, window_bounds = array<i64: 9, 1>}, {transform_indices = @transform_2, window_bounds = array<i64: 1>}, {transform_indices = @transform_3, window_bounds = array<i64: 1, 128>}]} {
    %c0 = arith.constant 0 : index
    %c0_0 = arith.constant 0 : index
    %0 = vector.load %arg1[%c0, %c0_0] : memref<9x128xf32, #tpu.memory_space<vmem>>, vector<9x128xf32>
    %c0_1 = arith.constant 0 : index
    %c0_2 = arith.constant 0 : index
    %1 = vector.load %arg2[%c0_1, %c0_2] : memref<9x1xf32, #tpu.memory_space<vmem>>, vector<9x1xf32>
    %2 = vector.broadcast %1 : vector<9x1xf32> to vector<9x128xf32>
    %3 = arith.mulf %0, %2 : vector<9x128xf32>
    %cst = arith.constant dense<0.000000e+00> : vector<128xf32>
    %4 = vector.multi_reduction <add>, %3, %cst [0] : vector<9x128xf32> to vector<128xf32>
    %5 = vector.shape_cast %4 : vector<128xf32> to vector<1x128xf32>
    %c0_3 = arith.constant 0 : index
    %6 = memref.load %arg3[%c0_3] : memref<1xf32, #tpu.memory_space<smem>>
    %7 = vector.broadcast %6 : f32 to vector<1x128xf32>
    %8 = arith.addf %5, %7 : vector<1x128xf32>
    %c0_4 = arith.constant 0 : index
    %c0_5 = arith.constant 0 : index
    %9 = vector.load %arg4[%c0_4, %c0_5] : memref<1x128xf32, #tpu.memory_space<vmem>>, vector<1x128xf32>
    tpu.vector_store %arg4[%c0_4, %c0_5], %8 {strides = array<i32>} : memref<1x128xf32, #tpu.memory_space<vmem>>, vector<1x128xf32>,
    return
  }
  func.func @transform_0(%arg0: i32) -> (i32, i32) {
    %c0_i32 = arith.constant 0 : i32
    %c0_i32_0 = arith.constant 0 : i32
    return %c0_i32, %arg0 : i32, i32
  }
  func.func @transform_1(%arg0: i32) -> (i32, i32) {
    %c0_i32 = arith.constant 0 : i32
    %c0_i32_0 = arith.constant 0 : i32
    %c0_i32_1 = arith.constant 0 : i32
    return %c0_i32, %c0_i32_0 : i32, i32
  }
  func.func @transform_2(%arg0: i32) -> i32 {
    %c0_i32 = arith.constant 0 : i32
    %c0_i32_0 = arith.constant 0 : i32
    return %c0_i32 : i32
  }
  func.func @transform_3(%arg0: i32) -> (i32, i32) {
    %c0_i32 = arith.constant 0 : i32
    %c0_i32_0 = arith.constant 0 : i32
    return %c0_i32, %arg0 : i32, i32
  }
}

</mosaic_0001>

<bundles_post_ra>
// kernel: tpu_custom_call.1
= control target key start
LH: loop header
LB: loop body
LE: loop exit
PB: predicated region body
PF: predicated region fallthrough
CT: control target
= control target key end

     0   :  { %v84_v1 = vmov 0   ;;  %s124_s0 = inlined_call_operand.vmem [shape: f32[9,128], index: 0, kind: input, shape index: {}]   ;;  %s125_s1 = inlined_call_operand.vmem [shape: f32[9,1], index: 1, kind: input, shape index: {}]   ;;  %s126_s2 = inlined_call_operand.<no memory space> [shape: f32[1], index: 2, kind: input, shape index: {}]   ;;  %s127_s3 = inlined_call_operand.hbm [shape: f32[1,128], index: 3, kind: output, shape index: {}]  }
   0x1   :  { %v19_v0 = vld [vmem:[%s125_s1 + $0x8] sm:$0x1]  ;;  %61 = vset.pattern.permute.xlu0 %v84_v1 }
   0x2   :  { %9 = vsyncpa [#allocation4], 0  ;;  %27 = vperm.xlu0 %61, %v19_v0   ;;  %v18_v2 = vld [vmem:[%s125_s1] sm:$0xff]  ;;  %v17_v3 = vld [vmem:[%s124_s0 + $0x8] sm:$0x1]  ;;  %vm32_vm0 = vcmask 1040384   ;;  %v42_v16 = vstv %s126_s2 }
   0x3   :  { %v16_v6 = vld [vmem:[%s124_s0] sm:$0xff]  ;;  %s85_s21 = smov [#allocation3]  }
   0x4   :  { %s51_s22 = sshll.u32 %s85_s21, 4  ;;  %s52_s22 = int_to_ptr.vmem [resolvable:$true] %s51_s22 }
   0x5   :  { %s62_s0 = scalar_lea.vmem %s52_s22, 16  ;;  %s66_s23 = scalar_lea.vmem %s52_s22, 32 }
   0x6   :  { %22 = vperm.xlu0 %61, %v18_v2   ;;  %p63_p0 = scmp.ne.s32.totalorder %s52_s22, %s62_s0  ;;  %p67_p1 = scmp.lt.s32.totalorder %s52_s22, %s52_s22 }
   0x7   :  { %p68_p2 = scmp.lt.s32.totalorder %s66_s23, %s62_s0 }
   0x9   :  { %p69_p3 = por %p68_p2, %p67_p1 }
   0xb   :  { %p70_p4 = pnand %p69_p3, %p63_p0 }
  0x7d   :  { %v28_v4 = vpop.permute.xlu0 %27 }
  0x7e   :  { %v31_v5 = vmul.f32 %v28_v4, %v17_v3 }
  0x80   :  { %v33_v9 = vsel %vm32_vm0, %v31_v5, 0.0 }
  0x81   :  { %v23_v7 = vpop.permute.xlu0 %22 }
  0x82   :  { %v30_v8 = vmul.f32 %v23_v7, %v16_v6 }
  0x84   :  { %v34_v10 = vadd.f32 %v33_v9, %v30_v8 }
  0x86   :  { %v35_v11 = vrot.slane %v34_v10, 4 }
  0x88   :  { %v36_v12 = vadd.f32 %v35_v11, %v34_v10 }
  0x8a   :  { %v37_v13 = vrot.slane %v36_v12, 2 }
  0x8c   :  { %v38_v14 = vadd.f32 %v37_v13, %v36_v12 }
  0x8e   :  { %v39_v15 = vrot.slane %v38_v14, 1 }
  0x90   :  { %v40_v17 = vadd.f32 %v39_v15, %v38_v14 }
  0x92   :  { %v43_v18 = vadd.f32 %v42_v16, %v40_v17 }
  0x94   :  { %44 = vst [vmem:[#allocation3] sm:$0x1] %v43_v18 }
  0x95   :  { %73 = shalt.err (!%p70_p4)
}
  0x96   :  { %54 = dma.vmem_to_hbm [thread:$0]  %s52_s22, 16, %s127_s3, [#allocation4]  }
  0x97   :  { %82 = dma.done.wait [#allocation4], 16  }
  0x98   :  { %83 = vsyncadd [#allocation4], 4294967280 }
  0x99   :  { %58 = vsyncpa [#allocation4], 1 }

</bundles_post_ra>
